<compile_context>
chip_gen: v5e
topology: v5e:2x2
jax: 0.10.0
libtpu: 0.0.40
codegen_flags: <defaults>
</compile_context>

<pallas_src>
import jax
import jax.numpy as jnp
from jax.experimental import pallas as pl
from jax.experimental.pallas import tpu as pltpu

# ---- synthetic config (matches __C.* fields, shrunk) -------------------------
HIDDEN_SIZE = 32      # __C.HIDDEN_SIZE
FLAT_MLP_SIZE = 64    # __C.FLAT_MLP_SIZE
FLAT_GLIMPSES = 2     # __C.FLAT_GLIMPSES
FLAT_OUT_SIZE = 64    # __C.FLAT_OUT_SIZE  (at production F=1024 the output store
                      #                     becomes fully lane-dense on its own)
B = 2                 # batch
S = 8                 # sequence length (multiple of 8 -> reshapes are layout no-ops)


def attflat_kernel(x_ref, bias_ref, w1_ref, b1_ref, w2_ref, wm_ref, bm_ref, o_ref):
    """AttFlat on one batch tile: MLP -> +mask/b2 bias -> softmax(S on lanes)
    -> glimpse-weighted sums -> fused linear_merge."""
    bt, s, h = x_ref.shape
    m, g = w2_ref.shape

    x = x_ref[...]                                            # (bt, S, H) bf16

    # ---- MLP: Linear(H->M) + bias + ReLU (dropout = eval identity) ----------
    # One matmul over all bt*S rows. With S a multiple of 8 (or bt == 1) the
    # reshape is a layout no-op.
    x2 = x.reshape(bt * s, h)                                 # (bt*S, H)
    hmid = jnp.dot(x2, w1_ref[...],
                   preferred_element_type=jnp.float32)        # (bt*S, M) f32 acc
    hmid = jnp.maximum(hmid + b1_ref[...], 0.0)               # f32

    # ---- logits: single flat MXU matmul, then XLU flip -> (bt, G, S) --------
    att = jnp.dot(hmid.astype(w2_ref.dtype), w2_ref[...],
                  preferred_element_type=jnp.float32)         # (bt*S, G)
    att = jnp.swapaxes(att.reshape(bt, s, g), 1, 2)           # (bt, G, S), seq on lanes
    att = att + bias_ref[...]                                 # b2 + (0 / -1e9 mask), f32

    # ---- softmax over the sequence (lane) axis; reciprocal on the EUP -------
    att = att - jnp.max(att, axis=-1, keepdims=True)
    e = jnp.exp(att)
    p = e * pl.reciprocal(jnp.sum(e, axis=-1, keepdims=True), approx=True)

    # ---- glimpse-weighted sums: (bt, G, H) -----------------------------------
    atted = jax.lax.dot_general(
        p.astype(x.dtype), x,
        dimension_numbers=(((2,), (1,)), ((0,), (0,))),
        preferred_element_type=jnp.float32)                   # (bt, G, H) f32

    # ---- linear_merge fused: (bt, G*H) @ (G*H, F) + bm ------------------------
    atted_cat = jnp.concatenate([atted[:, gi, :] for gi in range(g)], axis=-1)
    merged = jnp.dot(atted_cat.astype(wm_ref.dtype), wm_ref[...],
                     preferred_element_type=jnp.float32) + bm_ref[...]
    o_ref[...] = merged.astype(o_ref.dtype)[:, None, :]       # (bt, 1, F)


def attflat(x, x_mask, params, *, bt=None):
    """x: (B, S, H) f32, x_mask: (B, 1, 1, S) bool (True = padded/masked token)."""
    b, s, h = x.shape
    w1, b1, w2, b2, wm, bm = params
    m = w1.shape[1]
    g = w2.shape[1]
    f = wm.shape[1]

    # Batch tiling: >=2 grid steps when possible so both v7x TensorCores get
    # work and input DMA pipelines with compute.
    if bt is None:
        bt = max(1, b // 2)
    while b % bt != 0:
        bt -= 1
    nb = b // bt

    # bf16 MXU operands; all bias / softmax math stays f32 inside the kernel.
    x_bf = x.astype(jnp.bfloat16)
    w1_bf = w1.astype(jnp.bfloat16)
    w2_bf = w2.astype(jnp.bfloat16)
    wm_bf = wm.astype(jnp.bfloat16)

    # Additive bias with b2 folded in, sequence axis on lanes: (B, G, S).
    bias = (jnp.where(x_mask.reshape(b, 1, s), -1.0e9, 0.0)
            + jnp.transpose(b2)[None, :, :]).astype(jnp.float32)

    out = pl.pallas_call(
        attflat_kernel,
        out_shape=jax.ShapeDtypeStruct((b, 1, f), jnp.float32),
        grid_spec=pltpu.PrefetchScalarGridSpec(
            num_scalar_prefetch=0,
            grid=(nb,),
            in_specs=[
                pl.BlockSpec((bt, s, h), lambda i: (i, 0, 0)),   # x (bf16)
                pl.BlockSpec((bt, g, s), lambda i: (i, 0, 0)),   # mask + b2 bias (f32)
                pl.BlockSpec((h, m), lambda i: (0, 0)),          # W1 (bf16, resident)
                pl.BlockSpec((1, m), lambda i: (0, 0)),          # b1 (f32)
                pl.BlockSpec((m, g), lambda i: (0, 0)),          # W2 (bf16)
                pl.BlockSpec((g * h, f), lambda i: (0, 0)),      # Wm (bf16, original shape)
                pl.BlockSpec((1, f), lambda i: (0, 0)),          # bm (f32)
            ],
            out_specs=pl.BlockSpec((bt, 1, f), lambda i: (i, 0, 0)),
        ),
        compiler_params=pltpu.CompilerParams(
            dimension_semantics=("parallel",),
        ),
    )(x_bf, bias, w1_bf, b1, w2_bf, wm_bf, bm)
    return out.reshape(b, f)


def attflat_ref(x, x_mask, params):
    """Pure-JAX f32 reference mirroring the PyTorch forward (eval mode)."""
    w1, b1, w2, b2, wm, bm = params
    g = w2.shape[1]
    att = jnp.maximum(x @ w1 + b1, 0.0) @ w2 + b2                 # (B, S, G)
    mask = x_mask.reshape(x.shape[0], x.shape[1], 1)              # squeeze(1,1).unsqueeze(2)
    att = jnp.where(mask, -1.0e9, att)
    att = jax.nn.softmax(att, axis=1)
    att_list = [jnp.sum(att[:, :, i:i + 1] * x, axis=1) for i in range(g)]
    x_atted = jnp.concatenate(att_list, axis=1)                   # (B, G*H)
    return x_atted @ wm + bm


def init_params(key):
    k1, k2, k3, k4, k5, k6 = jax.random.split(key, 6)
    scale = 0.05
    w1 = scale * jax.random.normal(k1, (HIDDEN_SIZE, FLAT_MLP_SIZE), jnp.float32)
    b1 = scale * jax.random.normal(k2, (1, FLAT_MLP_SIZE), jnp.float32)
    w2 = scale * jax.random.normal(k3, (FLAT_MLP_SIZE, FLAT_GLIMPSES), jnp.float32)
    b2 = scale * jax.random.normal(k4, (1, FLAT_GLIMPSES), jnp.float32)
    wm = scale * jax.random.normal(k5, (HIDDEN_SIZE * FLAT_GLIMPSES, FLAT_OUT_SIZE), jnp.float32)
    bm = scale * jax.random.normal(k6, (1, FLAT_OUT_SIZE), jnp.float32)
    return (w1, b1, w2, b2, wm, bm)


if __name__ == "__main__":
    key = jax.random.PRNGKey(0)
    kx, kp = jax.random.split(key)

    x = jax.random.normal(kx, (B, S, HIDDEN_SIZE), jnp.float32)
    # valid lengths per batch element; True = padded token (PyTorch mask shape (B,1,1,S))
    lengths = jnp.array([S, S - 2], dtype=jnp.int32)
    x_mask = (jnp.arange(S)[None, :] >= lengths[:, None]).reshape(B, 1, 1, S)

    params = init_params(kp)

    out = attflat(x, x_mask, params)
    out = jax.block_until_ready(out)

    ref = attflat_ref(x, x_mask, params)
    assert out.shape == (B, FLAT_OUT_SIZE)
    # Tolerance accounts for bf16 MXU operands + approx (EUP) reciprocal in the
    # softmax; observed error is O(1e-3) at these scales.
    assert jnp.allclose(out, ref, atol=1e-2, rtol=1e-2), "mismatch vs reference"
    print("KERNEL_OK")
</pallas_src>

<mosaic_0001>
module attributes {stable_mosaic.version = 11 : i64} {
  func.func @attflat_kernel(%arg0: i32, %arg1: memref<1x8x32xbf16, #tpu.memory_space<vmem>>, %arg2: memref<1x2x8xf32, #tpu.memory_space<vmem>>, %arg3: memref<32x64xbf16, #tpu.memory_space<vmem>>, %arg4: memref<1x64xf32, #tpu.memory_space<vmem>>, %arg5: memref<64x2xbf16, #tpu.memory_space<vmem>>, %arg6: memref<64x64xbf16, #tpu.memory_space<vmem>>, %arg7: memref<1x64xf32, #tpu.memory_space<vmem>>, %arg8: memref<1x1x64xf32, #tpu.memory_space<vmem>>) attributes {dimension_semantics = [#tpu.dimension_semantics<parallel>], iteration_bounds = array<i64: 2>, scalar_prefetch = 0 : i64, scratch_operands = 0 : i64, tpu.core_type = #tpu.core_type<tc>, window_params = [{transform_indices = @transform_0, window_bounds = array<i64: 1, 8, 32>}, {transform_indices = @transform_1, window_bounds = array<i64: 1, 2, 8>}, {pipeline_mode = #tpu.pipeline_mode<synchronous>, transform_indices = @transform_2, window_bounds = array<i64: 32, 64>}, {pipeline_mode = #tpu.pipeline_mode<synchronous>, transform_indices = @transform_3, window_bounds = array<i64: 1, 64>}, {pipeline_mode = #tpu.pipeline_mode<synchronous>, transform_indices = @transform_4, window_bounds = array<i64: 64, 2>}, {pipeline_mode = #tpu.pipeline_mode<synchronous>, transform_indices = @transform_5, window_bounds = array<i64: 64, 64>}, {pipeline_mode = #tpu.pipeline_mode<synchronous>, transform_indices = @transform_6, window_bounds = array<i64: 1, 64>}, {transform_indices = @transform_7, window_bounds = array<i64: 1, 1, 64>}]} {
    %c0 = arith.constant 0 : index
    %c0_0 = arith.constant 0 : index
    %c0_1 = arith.constant 0 : index
    %0 = vector.load %arg1[%c0, %c0_0, %c0_1] : memref<1x8x32xbf16, #tpu.memory_space<vmem>>, vector<1x8x32xbf16>
    %1 = vector.shape_cast %0 : vector<1x8x32xbf16> to vector<8x32xbf16>
    %c0_2 = arith.constant 0 : index
    %c0_3 = arith.constant 0 : index
    %2 = vector.load %arg3[%c0_2, %c0_3] : memref<32x64xbf16, #tpu.memory_space<vmem>>, vector<32x64xbf16>
    %cst = arith.constant dense<0.000000e+00> : vector<8x64xf32>
    %3 = tpu.matmul %1, %2, %cst {dimension_numbers = #tpu.dot_dimension_numbers<[1], [0], [0], [1], [0, 0, 1, 1], [], []>} : vector<8x32xbf16>, vector<32x64xbf16>, vector<8x64xf32> -> vector<8x64xf32>
    %c0_4 = arith.constant 0 : index
    %c0_5 = arith.constant 0 : index
    %4 = vector.load %arg4[%c0_4, %c0_5] : memref<1x64xf32, #tpu.memory_space<vmem>>, vector<1x64xf32>
    %5 = vector.broadcast %4 : vector<1x64xf32> to vector<8x64xf32>
    %6 = arith.addf %3, %5 : vector<8x64xf32>
    %cst_6 = arith.constant 0.000000e+00 : f32
    %7 = vector.broadcast %cst_6 : f32 to vector<8x64xf32>
    %8 = arith.maximumf %6, %7 : vector<8x64xf32>
    %9 = arith.truncf %8 : vector<8x64xf32> to vector<8x64xbf16>
    %c0_7 = arith.constant 0 : index
    %c0_8 = arith.constant 0 : index
    %10 = vector.load %arg5[%c0_7, %c0_8] : memref<64x2xbf16, #tpu.memory_space<vmem>>, vector<64x2xbf16>
    %cst_9 = arith.constant dense<0.000000e+00> : vector<8x2xf32>
    %11 = tpu.matmul %9, %10, %cst_9 {dimension_numbers = #tpu.dot_dimension_numbers<[1], [0], [0], [1], [0, 0, 1, 1], [], []>} : vector<8x64xbf16>, vector<64x2xbf16>, vector<8x2xf32> -> vector<8x2xf32>
    %12 = vector.shape_cast %11 : vector<8x2xf32> to vector<1x8x2xf32>
    %13 = tpu.transpose %12, [0, 2, 1] : vector<1x8x2xf32> -> vector<1x2x8xf32>
    %c0_10 = arith.constant 0 : index
    %c0_11 = arith.constant 0 : index
    %c0_12 = arith.constant 0 : index
    %14 = vector.load %arg2[%c0_10, %c0_11, %c0_12] : memref<1x2x8xf32, #tpu.memory_space<vmem>>, vector<1x2x8xf32>
    %15 = arith.addf %13, %14 : vector<1x2x8xf32>
    %cst_13 = arith.constant dense<0xFF800000> : vector<1x2xf32>
    %16 = vector.multi_reduction <maximumf>, %15, %cst_13 [2] : vector<1x2x8xf32> to vector<1x2xf32>
    %17 = vector.shape_cast %16 : vector<1x2xf32> to vector<1x2x1xf32>
    %18 = vector.broadcast %17 : vector<1x2x1xf32> to vector<1x2x8xf32>
    %19 = arith.subf %15, %18 : vector<1x2x8xf32>
    %20 = math.exp %19 : vector<1x2x8xf32>
    %cst_14 = arith.constant dense<0.000000e+00> : vector<1x2xf32>
    %21 = vector.multi_reduction <add>, %20, %cst_14 [2] : vector<1x2x8xf32> to vector<1x2xf32>
    %22 = vector.shape_cast %21 : vector<1x2xf32> to vector<1x2x1xf32>
    %23 = tpu.reciprocal %22 {approx = true} : vector<1x2x1xf32> -> vector<1x2x1xf32>
    %24 = vector.broadcast %23 : vector<1x2x1xf32> to vector<1x2x8xf32>
    %25 = arith.mulf %20, %24 : vector<1x2x8xf32>
    %26 = arith.truncf %25 : vector<1x2x8xf32> to vector<1x2x8xbf16>
    %cst_15 = arith.constant dense<0.000000e+00> : vector<1x2x32xf32>
    %27 = tpu.matmul %26, %0, %cst_15 {dimension_numbers = #tpu.dot_dimension_numbers<[2], [1], [1], [2], [0, 0, 0, 1, 1, 2], [0], [0]>} : vector<1x2x8xbf16>, vector<1x8x32xbf16>, vector<1x2x32xf32> -> vector<1x2x32xf32>
    %28 = vector.extract_strided_slice %27 {offsets = [0, 0, 0], sizes = [1, 1, 32], strides = [1, 1, 1]} : vector<1x2x32xf32> to vector<1x1x32xf32>
    %29 = vector.shape_cast %28 : vector<1x1x32xf32> to vector<1x32xf32>
    %30 = vector.extract_strided_slice %27 {offsets = [0, 1, 0], sizes = [1, 1, 32], strides = [1, 1, 1]} : vector<1x2x32xf32> to vector<1x1x32xf32>
    %31 = vector.shape_cast %30 : vector<1x1x32xf32> to vector<1x32xf32>
    %32 = tpu.concatenate %29, %31 in 1 : vector<1x32xf32>, vector<1x32xf32> -> vector<1x64xf32>
    %33 = arith.truncf %32 : vector<1x64xf32> to vector<1x64xbf16>
    %c0_16 = arith.constant 0 : index
    %c0_17 = arith.constant 0 : index
    %34 = vector.load %arg6[%c0_16, %c0_17] : memref<64x64xbf16, #tpu.memory_space<vmem>>, vector<64x64xbf16>
    %cst_18 = arith.constant dense<0.000000e+00> : vector<1x64xf32>
    %35 = tpu.matmul %33, %34, %cst_18 {dimension_numbers = #tpu.dot_dimension_numbers<[1], [0], [0], [1], [0, 0, 1, 1], [], []>} : vector<1x64xbf16>, vector<64x64xbf16>, vector<1x64xf32> -> vector<1x64xf32>
    %c0_19 = arith.constant 0 : index
    %c0_20 = arith.constant 0 : index
    %36 = vector.load %arg7[%c0_19, %c0_20] : memref<1x64xf32, #tpu.memory_space<vmem>>, vector<1x64xf32>
    %37 = arith.addf %35, %36 : vector<1x64xf32>
    %38 = vector.shape_cast %37 : vector<1x64xf32> to vector<1x1x64xf32>
    %c0_21 = arith.constant 0 : index
    %c0_22 = arith.constant 0 : index
    %c0_23 = arith.constant 0 : index
    %39 = vector.load %arg8[%c0_21, %c0_22, %c0_23] : memref<1x1x64xf32, #tpu.memory_space<vmem>>, vector<1x1x64xf32>
    tpu.vector_store %arg8[%c0_21, %c0_22, %c0_23], %38 {strides = array<i32>} : memref<1x1x64xf32, #tpu.memory_space<vmem>>, vector<1x1x64xf32>,
    return
  }
  func.func @transform_0(%arg0: i32) -> (i32, i32, i32) {
    %c0_i32 = arith.constant 0 : i32
    %c0_i32_0 = arith.constant 0 : i32
    %c0_i32_1 = arith.constant 0 : i32
    return %arg0, %c0_i32, %c0_i32_0 : i32, i32, i32
  }
  func.func @transform_1(%arg0: i32) -> (i32, i32, i32) {
    %c0_i32 = arith.constant 0 : i32
    %c0_i32_0 = arith.constant 0 : i32
    %c0_i32_1 = arith.constant 0 : i32
    return %arg0, %c0_i32, %c0_i32_0 : i32, i32, i32
  }
  func.func @transform_2(%arg0: i32) -> (i32, i32) {
    %c0_i32 = arith.constant 0 : i32
    %c0_i32_0 = arith.constant 0 : i32
    %c0_i32_1 = arith.constant 0 : i32
    return %c0_i32, %c0_i32_0 : i32, i32
  }
  func.func @transform_3(%arg0: i32) -> (i32, i32) {
    %c0_i32 = arith.constant 0 : i32
    %c0_i32_0 = arith.constant 0 : i32
    %c0_i32_1 = arith.constant 0 : i32
    return %c0_i32, %c0_i32_0 : i32, i32
  }
  func.func @transform_4(%arg0: i32) -> (i32, i32) {
    %c0_i32 = arith.constant 0 : i32
    %c0_i32_0 = arith.constant 0 : i32
    %c0_i32_1 = arith.constant 0 : i32
    return %c0_i32, %c0_i32_0 : i32, i32
  }
  func.func @transform_5(%arg0: i32) -> (i32, i32) {
    %c0_i32 = arith.constant 0 : i32
    %c0_i32_0 = arith.constant 0 : i32
    %c0_i32_1 = arith.constant 0 : i32
    return %c0_i32, %c0_i32_0 : i32, i32
  }
  func.func @transform_6(%arg0: i32) -> (i32, i32) {
    %c0_i32 = arith.constant 0 : i32
    %c0_i32_0 = arith.constant 0 : i32
    %c0_i32_1 = arith.constant 0 : i32
    return %c0_i32, %c0_i32_0 : i32, i32
  }
  func.func @transform_7(%arg0: i32) -> (i32, i32, i32) {
    %c0_i32 = arith.constant 0 : i32
    %c0_i32_0 = arith.constant 0 : i32
    %c0_i32_1 = arith.constant 0 : i32
    return %arg0, %c0_i32, %c0_i32_0 : i32, i32, i32
  }
}

</mosaic_0001>

<bundles_post_ra>
// kernel: tpu_custom_call.1
= control target key start
LH: loop header
LB: loop body
LE: loop exit
PB: predicated region body
PF: predicated region fallthrough
CT: control target
= control target key end

     0   :  { %s1235_s0 = inlined_call_operand.hbm [shape: bf16[2,8,32], index: 0, kind: input, shape index: {}]   ;;  %s1236_s1 = inlined_call_operand.hbm [shape: f32[2,2,8], index: 1, kind: input, shape index: {}]   ;;  %s1237_s2 = inlined_call_operand.hbm [shape: bf16[32,64], index: 2, kind: input, shape index: {}]   ;;  %s1238_s3 = inlined_call_operand.vmem [shape: f32[1,64], index: 3, kind: input, shape index: {}]   ;;  %s1239_s4 = inlined_call_operand.vmem [shape: bf16[64,2], index: 4, kind: input, shape index: {}]   ;;  %s1240_s5 = inlined_call_operand.vmem [shape: bf16[64,64], index: 5, kind: input, shape index: {}]   ;;  %s1241_s6 = inlined_call_operand.vmem [shape: f32[1,64], index: 6, kind: input, shape index: {}]   ;;  %s1242_s7 = inlined_call_operand.hbm [shape: f32[2,1,64], index: 7, kind: output, shape index: {}]  }
   0x1   :  { %1248 = sst [smem:[#allocation18_spill]] %s1237_s2 }
   0x2   :  { %12 = vsyncpa [#allocation3], 0 }
   0x3   :  { %14 = vsyncpa [#allocation3 + $0x1], 0 }
   0x4   :  { %15 = vsyncpa [#allocation6], 0 }
   0x5   :  { %17 = vsyncpa [#allocation6 + $0x1], 0 }
   0x6   :  { %18 = vsyncpa [#allocation4], 0 }
   0x7   :  { %20 = vsyncpa [#allocation4 + $0x1], 0  ;;  %s1025_s24 = smov 0   ;;  %s1027_s25 = smov 0  }
   0x8   :  { %s1029_s26 = smov 0   ;;  %s1031_s27 = smov 0  }
   0x9 LB: > { %1249 = sst [smem:[#allocation13_spill]] %s967_s24  ;;  %s1049_s8 = sadd.s32 4294967295, %s979_s27   ;;  %s979_s27 = sphi %s1031_s27, %s1264_s27   ;;  %s975_s26 = sphi %s1029_s26, %s1266_s26   ;;  %s971_s25 = sphi %s1027_s25, %s1268_s25   ;;  %s967_s24 = sphi %s1025_s24, %s1267_s24  }
   0xa   : > { %1250 = sst [smem:[#allocation14_spill]] %s975_s26  ;;  %p677_p0 = scmp.ge.s32.totalorder %s979_s27, 1 }
   0xb   : > { %s1251_s2 = sld [smem:[#allocation18_spill]]  ;;  %p47_p1 = scmp.eq.s32.totalorder %s1049_s8, 0 }
   0xc   : > { %p214_p2 = scmp.lt.s32.totalorder %s979_s27, 3  ;;  %s981_s10 = smov [#allocation7]  }
   0xd   : > { %s227_s11 = sshll.u32 %s981_s10, 4  ;;  %s982_s12 = smov 64   ;;  %s228_s11 = int_to_ptr.vmem [resolvable:$true] %s227_s11 }
   0xe   : > { %p1054_p3 = pnand %p677_p0, %p214_p2  ;;  %s983_s13 = smov 4  }
   0xf   : > { %s676_s14 = sadd.s32 4294967294, %s979_s27   ;;  %s1065_s15 = sadd.s32 1, %s979_s27  }
  0x10   : > { %p754_p4 = pneg %p1054_p3  ;;  %1253 = sst [smem:[#allocation15_spill]] %s1065_s15 }
  0x11   : > { %s225_s30 = sshll.u32 %s1251_s2, 4  ;;  %s33_s16 = sadd.s32 1, %s975_s26  ;;  %s226_s30 = int_to_ptr.hbm [resolvable:$true] %s225_s30 }
  0x12   : > { %p755_p6 = pnand %p754_p4, %p47_p1  ;;  %s30_s17 = ssub.s32 %s979_s27, %s1065_s15 }
  0x13   : > { %p40_p7 = scmp.ne.s32.totalorder %s975_s26, %s971_s25  ;;  %p31_p8 = scmp.eq.s32.totalorder %s30_s17, 0 }
  0x14   : > { %757 = dma.hbm_to_vmem [thread:$0]  (!%p755_p6), %s226_s30, 256, %s228_s11, [#allocation6], %s982_s12, %s982_s12, %s983_s13  }
  0x15   : > { %p41_p9 = scmp.eq.s32.totalorder %s979_s27, 0  ;;  %p46_p10 = scmp.ne.s32.totalorder %s971_s25, %s967_s24 }
  0x16   : > { %p201_p11 = scmp.eq.s32.totalorder %s1049_s8, 1  ;;  %p207_p2 = scmp.eq.s32.totalorder %s676_s14, 1 }
  0x17   : > { %s1077_s18 = scalar_select %p31_p8, %s975_s26, %s33_s16  }
  0x18   : > { %p1079_p12 = por %p41_p9, %p40_p7  ;;  %p1085_p13 = por %p47_p1, %p46_p10 }
  0x19   : > { %1254 = sst [smem:[#allocation16_spill]] %s1077_s18  ;;  %p1089_p0 = por %p201_p11, %p40_p7 }
  0x1a   : > { %p770_p4 = scmp.lt.s32.totalorder %s979_s27, 2  ;;  %s1095_s22 = sand.u32 1, %s975_s26  }
  0x1b   : > { %p1097_p6 = por %p207_p2, %p46_p10  ;;  %s680_s28 = sshll.u32 %s1095_s22, 2 }
  0x1c   : > { %s681_s29 = sshll.u32 %s979_s27, 2  ;;  %s257_s13 = scalar_lea.vmem [#allocation2], %s680_s28 }
  0x1d   : > { %s1258_s23 = scalar_select %p1097_p6, 1, 0 }
  0x1e   : > { %s261_s11 = scalar_lea.hbm %s1235_s0, %s681_s29  ;;  %s265_s16 = sshll.u32 %s257_s13, 4  ;;  %s266_s16 = int_to_ptr.vmem [resolvable:$true] %s265_s16 }
  0x1f   : > { %1259 = sst [smem:[#allocation17_spill]] %s1258_s23  ;;  %s263_s12 = sshll.u32 %s261_s11, 4  ;;  %s264_s12 = int_to_ptr.hbm [resolvable:$true] %s263_s12 }
  0x20   : > { %p1108_p7 = pnand %p770_p4, %p1079_p12  ;;  %s272_s17 = sand.u32 1, %s979_s27  }
  0x21   : > { %s682_s2 = sshll.u32 %s1095_s22, 1  ;;  %s254_s18 = scalar_lea.sflag [#allocation3], %s1095_s22 }
  0x22   : > { %s845_s26 = sshra.s32 %s264_s12, 4  ;;  %p849_p9 = pneg %p1108_p7  ;;  %s846_s26 = int_to_ptr.hbm [resolvable:$true] %s845_s26 }
  0x23   : > { %s847_s15 = scalar_lea.hbm %s846_s26, 4  ;;  %s852_s29 = scalar_lea.hbm %s1235_s0, 8 }
  0x24   : > { %p848_p8 = scmp.ne.s32.totalorder %s846_s26, %s847_s15  ;;  %p853_p12 = scmp.lt.s32.totalorder %s846_s26, %s1235_s0 }
  0x25   : > { %p854_p2 = scmp.lt.s32.totalorder %s852_s29, %s847_s15 }
  0x26   : > { %p850_p10 = pnand %p849_p9, %p848_p8 }
  0x27   : > { %p855_p4 = por %p854_p2, %p853_p12 }
  0x28   : > { %p851_p11 = pneg %p850_p10 }
  0x2a   : > { %p856_p5 = pnand %p855_p4, %p851_p11 }
  0x2c   : > { %859 = shalt.err (!%p856_p5)
}
  0x2d   : > { %761 = dma.hbm_to_vmem [thread:$0]  (!%p1108_p7), %s264_s12, 64, %s266_s16, %s254_s18  }
  0x2e   : > { %s683_s22 = sshll.u32 %s979_s27, 1  ;;  %s276_s11 = scalar_lea.vmem [#allocation5], %s682_s2 }
  0x2f   : > { %s284_s13 = sshll.u32 %s276_s11, 4  ;;  %s280_s19 = scalar_lea.hbm %s1236_s1, %s683_s22  ;;  %s285_s13 = int_to_ptr.vmem [resolvable:$true] %s284_s13 }
  0x30   : > { %s282_s28 = sshll.u32 %s280_s19, 4  ;;  %s273_s26 = scalar_lea.sflag [#allocation6], %s272_s17  ;;  %s283_s28 = int_to_ptr.hbm [resolvable:$true] %s282_s28 }
  0x31   : > { %s875_s15 = sshra.s32 %s283_s28, 4  ;;  %s882_s2 = scalar_lea.hbm %s1236_s1, 4  ;;  %s876_s15 = int_to_ptr.hbm [resolvable:$true] %s875_s15 }
  0x32   : > { %s877_s29 = scalar_lea.hbm %s876_s15, 2  ;;  %p883_p11 = scmp.lt.s32.totalorder %s876_s15, %s1236_s1 }
  0x33   : > { %p878_p5 = scmp.ne.s32.totalorder %s876_s15, %s877_s29  ;;  %p884_p12 = scmp.lt.s32.totalorder %s882_s2, %s877_s29 }
  0x35   : > { %p880_p8 = pnand %p878_p5, %p849_p9  ;;  %p885_p2 = por %p884_p12, %p883_p11 }
  0x37   : > { %p881_p10 = pneg %p880_p8 }
  0x39   : > { %p886_p4 = pnand %p885_p2, %p881_p10 }
  0x3b   : > { %889 = shalt.err (!%p886_p4)
}
  0x3c   : > { %764 = dma.hbm_to_vmem [thread:$0]  (!%p1108_p7), %s283_s28, 32, %s285_s13, %s273_s26  }
  0x3d   : > { %293 = sbr.rel (%p1054_p3) target bundleno = 1153 (0x481), region = 48  ;;  %s1146_s24 = sand.u32 (!%p1054_p3), 1, %s971_s25  }
  0x3e   : > { %s685_s23 = sshll.u32 (!%p1054_p3), %s1146_s24, 2  ;;  %s296_s17 = scalar_lea.sflag (!%p1054_p3), [#allocation3], %s1146_s24 }
  0x3f   : > { %s299_s10 = scalar_lea.vmem (!%p1054_p3), [#allocation2], %s685_s23 }
  0x42   : > { %950 = dma.done.wait (%p1085_p13), %s296_s17, 64  }
  0x43   : > { %952 = vsyncadd (%p1085_p13), %s296_s17, 4294967232  ;;  %s305_s14 = sand.u32 1, %s1049_s8   ;;  %s686_s9 = sshll.u32 %s1146_s24, 1 }
  0x44   : > { %s306_s22 = scalar_lea.sflag [#allocation6], %s305_s14  ;;  %s1156_s11 = scalar_lea.vmem [#allocation5], %s686_s9 }
  0x45   : > { %954 = dma.done.wait (%p1085_p13), %s306_s22, 32  }
  0x46   : > { %956 = vsyncadd (%p1085_p13), %s306_s22, 4294967264 }
  0x47   : > { %958 = dma.done.wait (%p47_p1), [#allocation6], 256  }
  0x48   : > { %960 = vsyncadd (%p47_p1), [#allocation6], 4294967040  ;;  %v735_v0 = vld [vmem:[#allocation7 + $0x8] sm:$0xff]  ;;  %v734_v2 = vld [vmem:[#allocation7] sm:$0xff]  ;;  %vm372_vm0 = vcmask 261120   ;;  %vm423_vm1 = vcmask 523264   ;;  %s574_s28 = scalar_lea.hbm %s1242_s7, %s1049_s8 }
  0x49   : > { %v739_v1 = vld [vmem:[%s1239_s4 + $0x18] sm:$0xff]  ;;  %382 = vmatpush.bf16.msra.mxu0 %v735_v0  ;;  %v738_v3 = vld [vmem:[%s1239_s4 + $0x10] sm:$0xff]  ;;  %v351_v4 = vld [vmem:[%s299_s10] sm:$0xf]  ;;  %vm474_vm2 = vcmask 58368   ;;  %vm491_vm3 = vcmask 1043456  }
  0x4a   : > { %431 = vmatpush.bf16.msra.mxu1 %v739_v1  ;;  %v737_v5 = vld [vmem:[%s1239_s4 + $0x8] sm:$0xff]  ;;  %v736_v6 = vld [vmem:[%s1239_s4] sm:$0xff]  ;;  %v492_v24 = vsel %vm491_vm3, %v351_v4, 0  ;;  %vm487_vm4 = vcmask 64512   ;;  %v743_v29 = vld [vmem:[%s1240_s5 + $0x18] sm:$0xff]  ;;  %s984_s9 = smov 32  }
  0x4b   : > { %v810_v7 = vld [vmem:[%s1238_s3] ss:$0 sm:$0xff]  ;;  %v472_v15 = vld [vmem:[%s1156_s11] sm:$0x3]  ;;  %501 = vmatpush.bf16.msra.mxu2 %v492_v24  ;;  %554 = vmatpush.bf16.msra.mxu3 %v743_v29  ;;  %v742_v30 = vld [vmem:[%s1240_s5 + $0x10] sm:$0xff]  ;;  %s349_s15 = scalar_lea.vmem [#allocation8], %s1146_s24 }
  0x4c   : > { %v741_v31 = vld [vmem:[%s1240_s5 + $0x8] sm:$0xff]  ;;  %v740_v35 = vld [vmem:[%s1240_s5] sm:$0xff]  ;;  %s576_s29 = sshll.u32 %s349_s15, 4  ;;  %s578_s18 = sshll.u32 %s574_s28, 4  ;;  %vm563_vm5 = vcmask 516096   ;;  %s577_s29 = int_to_ptr.vmem [resolvable:$true] %s576_s29  ;;  %s579_s18 = int_to_ptr.hbm [resolvable:$true] %s578_s18 }
  0x4d   : > { %383 = vmatpush.bf16.msra.mxu0 %v734_v2  ;;  %v522_v39 = vld [vmem:[%s1241_s6] sm:$0x1]  ;;  %s566_s12 = scalar_lea.sflag [#allocation4], %s1146_s24  ;;  %s919_s2 = sshra.s32 %s579_s18, 4  ;;  %s920_s2 = int_to_ptr.hbm [resolvable:$true] %s919_s2 }
  0x4e   : > { %432 = vmatpush.bf16.msra.mxu1 %v738_v3  ;;  %s921_s16 = scalar_lea.hbm %s920_s2, 1  ;;  %s925_s23 = scalar_lea.hbm %s1242_s7, 2 }
  0x4f   : > { %555 = vmatpush.bf16.msra.mxu3 %v742_v30  ;;  %p922_p1 = scmp.ne.s32.totalorder %s920_s2, %s921_s16  ;;  %p926_p7 = scmp.lt.s32.totalorder %s920_s2, %s1242_s7 }
  0x50   : > { %696 = vmatmul.msk.bf16.vlgmr.msra.gmra.mxu0 %vm372_vm0, %v351_v4  ;;  %p927_p9 = scmp.lt.s32.totalorder %s925_s23, %s921_s16 }
  0x51   : > { %p923_p3 = pnand %p922_p1, %p1089_p0 }
  0x52   : > { %433 = vmatpush.bf16.msra.mxu1 %v737_v5  ;;  %p928_p5 = por %p927_p9, %p926_p7 }
  0x53   : > { %556 = vmatpush.bf16.msra.mxu3 %v741_v31  ;;  %p924_p13 = pneg %p923_p3 }
  0x55   : > { %p929_p8 = pnand %p928_p5, %p924_p13 }
  0x56   : > { %434 = vmatpush.bf16.msra.mxu1 %v736_v6 }
  0x57   : > { %557 = vmatpush.bf16.msra.mxu3 %v740_v35 }
  0xcd   : > { %v385_v8 = vpop.f32.mrf.mxu0 }
  0xce   : > { %v386_v9 = vadd.f32 %v810_v7, %v385_v8 }
  0xd0   : > { %v389_v10 = vmax.f32 %v386_v9, 0.0 }
  0xd2   : > { %v390_v11 = vpack.c.bf16 %v389_v10, %v389_v10 }
  0xd4   : > { %713 = vmatmul.msk.bf16.vlgmr.msra.gmra.mxu1 %vm423_vm1, %v390_v11 }
  0xd5   : > { %v387_v12 = vpop.f32.mrf.mxu0 }
 0x151   : > { %v436_v13 = vpop.f32.mrf.mxu1 }
 0x152   : > { %440 = vxpose.xlu0.b32.start.end [1/1] (short) (narrow) %v436_v13, 8 }
 0x159   : > { %v438_v14 = vpop.f32.mrf.mxu1 }
 0x1f6   : > { %v456_v16 = vpop.trf.xlu0 }
 0x1f7   : > { %v473_v17 = vadd.f32 %v472_v15, %v456_v16 }
 0x1f9   : > { %v475_v18 = vsel %vm474_vm2, %v473_v17, -inf }
 0x1fa   : > { %476 = vmax.xlane.f32.xlu0 %v475_v18 }
 0x26d   : > { %v477_v19 = vpop.xlane.xlu0 %476 }
 0x26e   : > { %v478_v20 = vsub.f32 %v473_v17, %v477_v19 }
 0x270   : > { %v479_v21 = vmul.f32 1.442695, %v478_v20 }
 0x272   : > { %811 = vpow2.f32 %v479_v21 }
 0x278   : > { %v812_v22 = vpop.eup %811 }
 0x279   : > { %v481_v23 = vsel %vm474_vm2, %v812_v22, 0.0 }
 0x27a   : > { %482 = vadd.xlane.f32.xlu1 %v481_v23 }
 0x2ed   : > { %v483_v25 = vpop.xlane.xlu1 %482 }
 0x2ee   : > { %813 = vrcp.f32 %v483_v25 }
 0x2f4   : > { %v814_v26 = vpop.eup %813 }
 0x2f5   : > { %v485_v27 = vmul.f32 %v814_v26, %v812_v22 }
 0x2f7   : > { %v486_v28 = vpack.c.bf16 %v485_v27, %v485_v27 }
 0x2f9   : > { %714 = vmatmul.msk.bf16.vlgmr.msra.gmra.mxu2 %vm487_vm4, %v486_v28 }
 0x37c   : > { %v503_v32 = vpop.f32.mrf.mxu2 }
 0x37d   : > { %v508_v33 = vrot.slane %v503_v32, 1 }
 0x37f   : > { %509 = vrot.lane.b32.xlu1 %v508_v33, %s984_s9 }
 0x384   : > { %v505_v34 = vpop.f32.mrf.mxu2 }
 0x3f1   : > { %v510_v36 = vpop.permute.xlu1 %509 }
 0x3f2   : > { %v512_v37 = vsel %vm372_vm0, %v503_v32, %v510_v36 }
 0x3f3   : > { %v513_v38 = vpack.c.bf16 %v512_v37, %v512_v37 }
 0x3f5   : > { %731 = vmatmul.msk.bf16.vlgmr.msra.gmra.mxu3 %vm423_vm1, %v513_v38 }
 0x478   : > { %v559_v40 = vpop.f32.mrf.mxu3 }
 0x479   : > { %v560_v41 = vadd.f32 %v559_v40, %v522_v39 }
 0x47b   : > { %564 = vst.msk [vmem:[%s349_s15] sm:$0x1] %vm563_vm5, %v560_v41 }
 0x47c   : > { %932 = shalt.err (!%p929_p8)
}
 0x47d   : > { %752 = dma.vmem_to_hbm [thread:$0]  (%p1089_p0), %s577_s29, 16, %s579_s18, %s566_s12  }
 0x480   : > { %v561_v42 = vpop.f32.mrf.mxu3 }
 0x481 PF: > { %s1261_s24 = sld [smem:[#allocation13_spill]]  ;;  %p1263_p10 = scmp.ge.s32.totalorder %s979_s27, 2 }
 0x483   : > { %p766_p11 = pnand %p1263_p10, %p1097_p6 }
 0x485   : > { %p767_p12 = pneg %p766_p11 }
 0x487   : > { %s590_s9 = sand.u32 1, %s1261_s24  }
 0x488   : > { %s591_s22 = scalar_lea.sflag [#allocation4], %s590_s9 }
 0x489   : > { %962 = dma.done.wait (%p767_p12), %s591_s22, 16  }
 0x48a   : > { %964 = vsyncadd (%p767_p12), %s591_s22, 4294967280  ;;  %s1264_s27 = sld [smem:[#allocation15_spill]]  ;;  %s1267_s24 = smov %s971_s25 }
 0x48b   : > { %s1265_s11 = sld [smem:[#allocation14_spill]] }
 0x48c   : > { %s1266_s26 = sld [smem:[#allocation16_spill]] }
 0x490   : > { %p23_p2 = scmp.ge.s32.totalorder %s1264_s27, 4  }
 0x491   : > { %s1268_s25 = smov %s1265_s11 }
 0x492   :  { %25 = sbr.rel (!%p23_p2) target bundleno = 9 (0x9), region = 110 }
 0x497   :  { %596 = vsyncpa [#allocation3], 1 }
 0x498   :  { %598 = vsyncpa [#allocation3 + $0x1], 1 }
 0x499   :  { %599 = vsyncpa [#allocation6], 1 }
 0x49a   :  { %601 = vsyncpa [#allocation6 + $0x1], 1 }
 0x49b   :  { %602 = vsyncpa [#allocation4], 1 }
 0x49c   :  { %604 = vsyncpa [#allocation4 + $0x1], 1 }

</bundles_post_ra>
